<compile_context>
chip_gen: v6e
topology: v6e:2x2x1
jax: 0.10.0
libtpu: 0.0.40
codegen_flags: <defaults>
</compile_context>

<pallas_src>
import jax
import jax.numpy as jnp
from jax import lax
from jax.experimental import pallas as pl
from jax.experimental.pallas import tpu as pltpu


def _round_up(x, m):
    return (x + m - 1) // m * m


def _cdiv(a, b):
    return (a + b - 1) // b


def _make_dice_kernel(hw_total, block_hw, nhw, row_chunk=64):
    """Build the kernel for a given (static) spatial tiling."""
    n_stripes = block_hw // 128
    rem = hw_total - (nhw - 1) * block_hw      # valid columns in the last HW block
    last_full = rem // 128                     # full 128-stripes in the last block
    last_partial = rem % 128                   # valid lanes in its partial stripe
    ragged = rem != block_hw

    def kernel(pr_ref, gt_ref, dice_ref, inter_acc, true_acc, pred_acc):
        j = pl.program_id(1)
        block_bc = inter_acc.shape[0]

        @pl.when(j == 0)
        def _init():
            inter_acc[...] = jnp.zeros_like(inter_acc)
            true_acc[...] = jnp.zeros_like(true_acc)
            pred_acc[...] = jnp.zeros_like(pred_acc)

        def accumulate(full_stripes, partial_lanes):
            # Lane-wise partial sums: steady state is vld + VPU only; the
            # cross-lane (XLU) reduce is deferred to the finalize step.
            # Row-chunking keeps the running partials register-resident so the
            # VMEM accumulators are read-modified-written once per step.
            for r0 in range(0, block_bc, row_chunk):
                rc = min(row_chunk, block_bc - r0)
                rows = slice(r0, r0 + rc)
                inter_p = jnp.zeros((rc, 128), jnp.float32)
                true_p = jnp.zeros((rc, 128), jnp.float32)
                pred_p = jnp.zeros((rc, 128), jnp.float32)
                for k in range(full_stripes):
                    cols = slice(k * 128, (k + 1) * 128)
                    pr_k = pr_ref[rows, cols]
                    gt_k = gt_ref[rows, cols].astype(jnp.float32)
                    pred_f = (pr_k > 0).astype(jnp.float32)   # reused twice
                    inter_p = inter_p + gt_k * pred_f
                    true_p = true_p + gt_k
                    pred_p = pred_p + pred_f
                if partial_lanes:
                    # Single ragged stripe of the last HW block: mask invalid
                    # lanes in ALL three sums (the un-DMA'd tail of the VMEM
                    # buffer holds undefined data).
                    k = full_stripes
                    cols = slice(k * 128, (k + 1) * 128)
                    lane = lax.broadcasted_iota(jnp.int32, (rc, 128), 1)
                    valid = lane < partial_lanes
                    pr_k = pr_ref[rows, cols]
                    gt_k = gt_ref[rows, cols].astype(jnp.float32)
                    pred_f = jnp.where(valid & (pr_k > 0), 1.0, 0.0).astype(jnp.float32)
                    gt_m = jnp.where(valid, gt_k, 0.0)
                    inter_p = inter_p + gt_m * pred_f
                    true_p = true_p + gt_m
                    pred_p = pred_p + pred_f
                inter_acc[rows, :] += inter_p
                true_acc[rows, :] += true_p
                pred_acc[rows, :] += pred_p

        if not ragged:
            accumulate(n_stripes, 0)
        else:
            @pl.when(j < nhw - 1)
            def _full_blocks():
                accumulate(n_stripes, 0)

            @pl.when(j == nhw - 1)
            def _last_block():
                accumulate(last_full, last_partial)

        @pl.when(j == pl.num_programs(1) - 1)
        def _finalize():
            # One cross-lane reduce per row block (not per HW step).
            s_i = jnp.sum(inter_acc[...], axis=1, keepdims=True)
            s_t = jnp.sum(true_acc[...], axis=1, keepdims=True)
            s_p = jnp.sum(pred_acc[...], axis=1, keepdims=True)
            empty = jnp.logical_and(s_t == 0.0, s_p == 0.0)
            denom = jnp.where(empty, 1.0, s_t + s_p)          # NaN-safe
            dice = jnp.where(empty, 1.0, 2.0 * s_i / denom)   # (block_bc, 1)
            # Lane-dense (unmasked) store of the per-slice dice.
            dice_ref[...] = jnp.broadcast_to(dice, dice_ref.shape)

    return kernel


def dice_loss(y_pr, y_gt, *,
              target_block_elems=2 << 20,        # ~8 MiB / input block in f32
              max_block_hw=32768,
              max_block_bc=1024,
              vmem_limit_bytes=48 * 1024 * 1024):
    """Pallas implementation of DiceLoss.forward(y_pr, y_gt). NCHW inputs.

    Inputs are consumed in their native dtype: pass bf16 logits and/or a
    bf16 / uint8 mask to cut HBM traffic; accumulation is always f32.
    """
    assert y_pr.shape == y_gt.shape and y_pr.ndim == 4
    B, C, H, W = y_pr.shape
    BC, HW = B * C, H * W

    # No padded copies: ragged edges are handled inside the kernel.
    pr = y_pr.reshape(BC, HW)
    gt = y_gt.reshape(BC, HW)

    # Spatial (lane) tiling: multiple of 128, capped to bound VMEM / unroll.
    block_hw = min(_round_up(HW, 128), max_block_hw)
    nhw = _cdiv(HW, block_hw)

    # Row (slice) tiling: fill the element budget, multiple of 8 sublanes.
    rows_ceil = _round_up(BC, 8)
    block_bc = (target_block_elems // block_hw) // 8 * 8
    block_bc = max(8, min(block_bc, rows_ceil, max_block_bc))
    nbc = _cdiv(BC, block_bc)
    # v7x: the row axis is 'parallel' (sharded across the 2 TensorCores) --
    # keep at least 2 row blocks whenever BC allows it.
    if nbc < 2 and BC > 8:
        block_bc = _round_up(_cdiv(BC, 2), 8)
        nbc = _cdiv(BC, block_bc)

    out_rows = nbc * block_bc   # no ragged output blocks; extra rows sliced off

    kernel = _make_dice_kernel(HW, block_hw, nhw)

    dice = pl.pallas_call(
        kernel,
        out_shape=jax.ShapeDtypeStruct((out_rows, 128), jnp.float32),
        grid_spec=pltpu.PrefetchScalarGridSpec(
            num_scalar_prefetch=0,
            grid=(nbc, nhw),
            in_specs=[
                pl.BlockSpec((block_bc, block_hw), lambda i, j: (i, j)),
                pl.BlockSpec((block_bc, block_hw), lambda i, j: (i, j)),
            ],
            out_specs=pl.BlockSpec((block_bc, 128), lambda i, j: (i, 0)),
            scratch_shapes=[
                pltpu.VMEM((block_bc, 128), jnp.float32),  # sum(gt * pred)
                pltpu.VMEM((block_bc, 128), jnp.float32),  # sum(gt)
                pltpu.VMEM((block_bc, 128), jnp.float32),  # sum(pred)
            ],
        ),
        compiler_params=pltpu.CompilerParams(
            # Row axis parallel (shardable across v7x's two TensorCores);
            # HW axis is a running reduction -> arbitrary, last.
            dimension_semantics=("parallel", "arbitrary"),
            vmem_limit_bytes=vmem_limit_bytes,
        ),
    )(pr, gt)

    dice_per_slice = dice[:BC, 0]
    return (1.0 - jnp.mean(dice_per_slice)).astype(jnp.float32)


def _reference_dice_loss(y_pr, y_gt):
    """Pure-JAX reference matching the numpy code in the PyTorch module."""
    pred_bin = (jax.nn.sigmoid(y_pr.astype(jnp.float32)) > 0.5).astype(jnp.float32)
    gt = y_gt.astype(jnp.float32)
    inter = jnp.sum(gt * pred_bin, axis=(2, 3))
    s_true = jnp.sum(gt, axis=(2, 3))
    s_pred = jnp.sum(pred_bin, axis=(2, 3))
    dice = jnp.where(
        jnp.logical_and(s_true == 0.0, s_pred == 0.0),
        1.0,
        2.0 * inter / (s_true + s_pred),
    )
    return 1.0 - jnp.mean(dice)


if __name__ == "__main__":
    key = jax.random.PRNGKey(0)
    k1, k2 = jax.random.split(key)

    B, C, H, W = 2, 4, 16, 16
    y_pr = jax.random.normal(k1, (B, C, H, W), dtype=jnp.float32)           # logits
    y_gt = jax.random.bernoulli(k2, 0.5, (B, C, H, W)).astype(jnp.float32)  # mask

    # f32 inputs.
    loss = jax.block_until_ready(dice_loss(y_pr, y_gt))
    ref = jax.block_until_ready(_reference_dice_loss(y_pr, y_gt))
    assert jnp.allclose(loss, ref, atol=1e-5), (loss, ref)

    # Narrow-dtype path (bf16 logits + bf16 mask): ~half the HBM traffic.
    y_pr_bf = y_pr.astype(jnp.bfloat16)
    y_gt_bf = y_gt.astype(jnp.bfloat16)
    loss_bf = jax.block_until_ready(dice_loss(y_pr_bf, y_gt_bf))
    ref_bf = jax.block_until_ready(_reference_dice_loss(y_pr_bf, y_gt_bf))
    assert jnp.allclose(loss_bf, ref_bf, atol=1e-5), (loss_bf, ref_bf)

    # Empty-slice case (sum(gt) == 0 and sum(pred) == 0 -> dice == 1).
    y_pr2 = y_pr.at[:, 0].set(-5.0)
    y_gt2 = y_gt.at[:, 0].set(0.0)
    loss2 = jax.block_until_ready(dice_loss(y_pr2, y_gt2))
    ref2 = jax.block_until_ready(_reference_dice_loss(y_pr2, y_gt2))
    assert jnp.allclose(loss2, ref2, atol=1e-5), (loss2, ref2)

    # Ragged spatial size (HW not a multiple of 128): exercises the in-kernel
    # lane-mask path that replaced the jnp.pad HBM round-trip.
    H3, W3 = 10, 10
    y_pr3 = jax.random.normal(k1, (B, C, H3, W3), dtype=jnp.float32)
    y_gt3 = jax.random.bernoulli(k2, 0.3, (B, C, H3, W3)).astype(jnp.float32)
    loss3 = jax.block_until_ready(dice_loss(y_pr3, y_gt3))
    ref3 = jax.block_until_ready(_reference_dice_loss(y_pr3, y_gt3))
    assert jnp.allclose(loss3, ref3, atol=1e-5), (loss3, ref3)

    print("KERNEL_OK")
</pallas_src>

<mosaic_0001>
module attributes {stable_mosaic.version = 11 : i64} {
  func.func @kernel(%arg0: i32, %arg1: i32, %arg2: memref<8x256xf32, #tpu.memory_space<vmem>>, %arg3: memref<8x256xf32, #tpu.memory_space<vmem>>, %arg4: memref<8x128xf32, #tpu.memory_space<vmem>>, %arg5: memref<8x128xf32, #tpu.memory_space<vmem>>, %arg6: memref<8x128xf32, #tpu.memory_space<vmem>>, %arg7: memref<8x128xf32, #tpu.memory_space<vmem>>) attributes {dimension_semantics = [#tpu.dimension_semantics<parallel>, #tpu.dimension_semantics<arbitrary>], iteration_bounds = array<i64: 1, 1>, scalar_prefetch = 0 : i64, scratch_operands = 3 : i64, tpu.core_type = #tpu.core_type<tc>, window_params = [{transform_indices = @transform_0, window_bounds = array<i64: 8, 256>}, {transform_indices = @transform_1, window_bounds = array<i64: 8, 256>}, {transform_indices = @transform_2, window_bounds = array<i64: 8, 128>}]} {
    %c0_i32 = arith.constant 0 : i32
    %0 = arith.cmpi eq, %arg1, %c0_i32 : i32
    %1 = arith.extui %0 : i1 to i32
    %c0_i32_0 = arith.constant 0 : i32
    %2 = arith.cmpi ne, %1, %c0_i32_0 : i32
    scf.if %2 {
      %cst_25 = arith.constant 0.000000e+00 : f32
      %38 = vector.broadcast %cst_25 : f32 to vector<8x128xf32>
      %c0_26 = arith.constant 0 : index
      %c0_27 = arith.constant 0 : index
      %39 = vector.load %arg5[%c0_26, %c0_27] : memref<8x128xf32, #tpu.memory_space<vmem>>, vector<8x128xf32>
      tpu.vector_store %arg5[%c0_26, %c0_27], %38 {strides = array<i32>} : memref<8x128xf32, #tpu.memory_space<vmem>>, vector<8x128xf32>,
      %cst_28 = arith.constant 0.000000e+00 : f32
      %40 = vector.broadcast %cst_28 : f32 to vector<8x128xf32>
      %c0_29 = arith.constant 0 : index
      %c0_30 = arith.constant 0 : index
      %41 = vector.load %arg6[%c0_29, %c0_30] : memref<8x128xf32, #tpu.memory_space<vmem>>, vector<8x128xf32>
      tpu.vector_store %arg6[%c0_29, %c0_30], %40 {strides = array<i32>} : memref<8x128xf32, #tpu.memory_space<vmem>>, vector<8x128xf32>,
      %cst_31 = arith.constant 0.000000e+00 : f32
      %42 = vector.broadcast %cst_31 : f32 to vector<8x128xf32>
      %c0_32 = arith.constant 0 : index
      %c0_33 = arith.constant 0 : index
      %43 = vector.load %arg7[%c0_32, %c0_33] : memref<8x128xf32, #tpu.memory_space<vmem>>, vector<8x128xf32>
      tpu.vector_store %arg7[%c0_32, %c0_33], %42 {strides = array<i32>} : memref<8x128xf32, #tpu.memory_space<vmem>>, vector<8x128xf32>,
    } else {
    }
    %cst = arith.constant 0.000000e+00 : f32
    %3 = vector.broadcast %cst : f32 to vector<8x128xf32>
    %cst_1 = arith.constant 0.000000e+00 : f32
    %4 = vector.broadcast %cst_1 : f32 to vector<8x128xf32>
    %cst_2 = arith.constant 0.000000e+00 : f32
    %5 = vector.broadcast %cst_2 : f32 to vector<8x128xf32>
    %c0 = arith.constant 0 : index
    %c0_3 = arith.constant 0 : index
    %6 = vector.load %arg2[%c0, %c0_3] : memref<8x256xf32, #tpu.memory_space<vmem>>, vector<8x128xf32>
    %c0_4 = arith.constant 0 : index
    %c0_5 = arith.constant 0 : index
    %7 = vector.load %arg3[%c0_4, %c0_5] : memref<8x256xf32, #tpu.memory_space<vmem>>, vector<8x128xf32>
    %cst_6 = arith.constant 0.000000e+00 : f32
    %8 = vector.broadcast %cst_6 : f32 to vector<8x128xf32>
    %9 = arith.cmpf ogt, %6, %8 : vector<8x128xf32>
    %10 = arith.extui %9 : vector<8x128xi1> to vector<8x128xi32>
    %11 = arith.sitofp %10 : vector<8x128xi32> to vector<8x128xf32>
    %12 = arith.mulf %7, %11 : vector<8x128xf32>
    %13 = arith.addf %3, %12 : vector<8x128xf32>
    %14 = arith.addf %4, %7 : vector<8x128xf32>
    %15 = arith.addf %5, %11 : vector<8x128xf32>
    %c0_7 = arith.constant 0 : index
    %c128 = arith.constant 128 : index
    %16 = vector.load %arg2[%c0_7, %c128] : memref<8x256xf32, #tpu.memory_space<vmem>>, vector<8x128xf32>
    %c0_8 = arith.constant 0 : index
    %c128_9 = arith.constant 128 : index
    %17 = vector.load %arg3[%c0_8, %c128_9] : memref<8x256xf32, #tpu.memory_space<vmem>>, vector<8x128xf32>
    %cst_10 = arith.constant 0.000000e+00 : f32
    %18 = vector.broadcast %cst_10 : f32 to vector<8x128xf32>
    %19 = arith.cmpf ogt, %16, %18 : vector<8x128xf32>
    %20 = arith.extui %19 : vector<8x128xi1> to vector<8x128xi32>
    %21 = arith.sitofp %20 : vector<8x128xi32> to vector<8x128xf32>
    %22 = arith.mulf %17, %21 : vector<8x128xf32>
    %23 = arith.addf %13, %22 : vector<8x128xf32>
    %24 = arith.addf %14, %17 : vector<8x128xf32>
    %25 = arith.addf %15, %21 : vector<8x128xf32>
    %c0_11 = arith.constant 0 : index
    %c0_12 = arith.constant 0 : index
    %26 = vector.load %arg5[%c0_11, %c0_12] : memref<8x128xf32, #tpu.memory_space<vmem>>, vector<8x128xf32>
    %27 = arith.addf %26, %23 : vector<8x128xf32>
    %c0_13 = arith.constant 0 : index
    %c0_14 = arith.constant 0 : index
    %28 = vector.load %arg5[%c0_13, %c0_14] : memref<8x128xf32, #tpu.memory_space<vmem>>, vector<8x128xf32>
    tpu.vector_store %arg5[%c0_13, %c0_14], %27 {strides = array<i32>} : memref<8x128xf32, #tpu.memory_space<vmem>>, vector<8x128xf32>,
    %c0_15 = arith.constant 0 : index
    %c0_16 = arith.constant 0 : index
    %29 = vector.load %arg6[%c0_15, %c0_16] : memref<8x128xf32, #tpu.memory_space<vmem>>, vector<8x128xf32>
    %30 = arith.addf %29, %24 : vector<8x128xf32>
    %c0_17 = arith.constant 0 : index
    %c0_18 = arith.constant 0 : index
    %31 = vector.load %arg6[%c0_17, %c0_18] : memref<8x128xf32, #tpu.memory_space<vmem>>, vector<8x128xf32>
    tpu.vector_store %arg6[%c0_17, %c0_18], %30 {strides = array<i32>} : memref<8x128xf32, #tpu.memory_space<vmem>>, vector<8x128xf32>,
    %c0_19 = arith.constant 0 : index
    %c0_20 = arith.constant 0 : index
    %32 = vector.load %arg7[%c0_19, %c0_20] : memref<8x128xf32, #tpu.memory_space<vmem>>, vector<8x128xf32>
    %33 = arith.addf %32, %25 : vector<8x128xf32>
    %c0_21 = arith.constant 0 : index
    %c0_22 = arith.constant 0 : index
    %34 = vector.load %arg7[%c0_21, %c0_22] : memref<8x128xf32, #tpu.memory_space<vmem>>, vector<8x128xf32>
    tpu.vector_store %arg7[%c0_21, %c0_22], %33 {strides = array<i32>} : memref<8x128xf32, #tpu.memory_space<vmem>>, vector<8x128xf32>,
    %c0_i32_23 = arith.constant 0 : i32
    %35 = arith.cmpi eq, %arg1, %c0_i32_23 : i32
    %36 = arith.extui %35 : i1 to i32
    %c0_i32_24 = arith.constant 0 : i32
    %37 = arith.cmpi ne, %36, %c0_i32_24 : i32
    scf.if %37 {
      %c0_25 = arith.constant 0 : index
      %c0_26 = arith.constant 0 : index
      %38 = vector.load %arg5[%c0_25, %c0_26] : memref<8x128xf32, #tpu.memory_space<vmem>>, vector<8x128xf32>
      %cst_27 = arith.constant dense<0.000000e+00> : vector<8xf32>
      %39 = vector.multi_reduction <add>, %38, %cst_27 [1] : vector<8x128xf32> to vector<8xf32>
      %40 = vector.shape_cast %39 : vector<8xf32> to vector<8x1xf32>
      %c0_28 = arith.constant 0 : index
      %c0_29 = arith.constant 0 : index
      %41 = vector.load %arg6[%c0_28, %c0_29] : memref<8x128xf32, #tpu.memory_space<vmem>>, vector<8x128xf32>
      %cst_30 = arith.constant dense<0.000000e+00> : vector<8xf32>
      %42 = vector.multi_reduction <add>, %41, %cst_30 [1] : vector<8x128xf32> to vector<8xf32>
      %43 = vector.shape_cast %42 : vector<8xf32> to vector<8x1xf32>
      %c0_31 = arith.constant 0 : index
      %c0_32 = arith.constant 0 : index
      %44 = vector.load %arg7[%c0_31, %c0_32] : memref<8x128xf32, #tpu.memory_space<vmem>>, vector<8x128xf32>
      %cst_33 = arith.constant dense<0.000000e+00> : vector<8xf32>
      %45 = vector.multi_reduction <add>, %44, %cst_33 [1] : vector<8x128xf32> to vector<8xf32>
      %46 = vector.shape_cast %45 : vector<8xf32> to vector<8x1xf32>
      %cst_34 = arith.constant 0.000000e+00 : f32
      %47 = vector.broadcast %cst_34 : f32 to vector<8x1xf32>
      %48 = arith.cmpf oeq, %43, %47 : vector<8x1xf32>
      %cst_35 = arith.constant 0.000000e+00 : f32
      %49 = vector.broadcast %cst_35 : f32 to vector<8x1xf32>
      %50 = arith.cmpf oeq, %46, %49 : vector<8x1xf32>
      %51 = arith.andi %48, %50 : vector<8x1xi1>
      %52 = arith.addf %43, %46 : vector<8x1xf32>
      %cst_36 = arith.constant 1.000000e+00 : f32
      %53 = vector.broadcast %cst_36 : f32 to vector<8x1xf32>
      %54 = arith.select %51, %53, %52 : vector<8x1xi1>, vector<8x1xf32>
      %cst_37 = arith.constant 2.000000e+00 : f32
      %55 = vector.broadcast %cst_37 : f32 to vector<8x1xf32>
      %56 = arith.mulf %55, %40 : vector<8x1xf32>
      %57 = arith.divf %56, %54 : vector<8x1xf32>
      %cst_38 = arith.constant 1.000000e+00 : f32
      %58 = vector.broadcast %cst_38 : f32 to vector<8x1xf32>
      %59 = arith.select %51, %58, %57 : vector<8x1xi1>, vector<8x1xf32>
      %60 = vector.shape_cast %59 : vector<8x1xf32> to vector<8x1xf32>
      %61 = vector.broadcast %60 : vector<8x1xf32> to vector<8x128xf32>
      %c0_39 = arith.constant 0 : index
      %c0_40 = arith.constant 0 : index
      %62 = vector.load %arg4[%c0_39, %c0_40] : memref<8x128xf32, #tpu.memory_space<vmem>>, vector<8x128xf32>
      tpu.vector_store %arg4[%c0_39, %c0_40], %61 {strides = array<i32>} : memref<8x128xf32, #tpu.memory_space<vmem>>, vector<8x128xf32>,
    } else {
    }
    return
  }
  func.func @transform_0(%arg0: i32, %arg1: i32) -> (i32, i32) {
    %c0_i32 = arith.constant 0 : i32
    return %arg0, %arg1 : i32, i32
  }
  func.func @transform_1(%arg0: i32, %arg1: i32) -> (i32, i32) {
    %c0_i32 = arith.constant 0 : i32
    return %arg0, %arg1 : i32, i32
  }
  func.func @transform_2(%arg0: i32, %arg1: i32) -> (i32, i32) {
    %c0_i32 = arith.constant 0 : i32
    %c0_i32_0 = arith.constant 0 : i32
    return %arg0, %c0_i32 : i32, i32
  }
}

</mosaic_0001>

<bundles_post_ra>
// kernel: tpu_custom_call.1
= control target key start
LH: loop header
LB: loop body
LE: loop exit
PB: predicated region body
PF: predicated region fallthrough
CT: control target
= control target key end

     0   :  { %7 = vsyncpa [#allocation6], 0  ;;  %s210_s0 = inlined_call_operand.hbm [shape: f32[8,256], index: 0, kind: input, shape index: {}]   ;;  %s211_s1 = inlined_call_operand.hbm [shape: f32[8,256], index: 1, kind: input, shape index: {}]   ;;  %s212_s2 = inlined_call_operand.hbm [shape: f32[8,128], index: 2, kind: output, shape index: {}]  }
   0x1   :  { %8 = vsyncpa [#allocation9], 0 }
   0x2   :  { %9 = vsyncpa [#allocation7], 0  ;;  %s182_s9 = smov [#allocation5]   ;;  %s183_s11 = smov [#allocation8]  }
   0x3   :  { %s16_s10 = sshll.u32 %s182_s9, 4  ;;  %s26_s12 = sshll.u32 %s183_s11, 4  ;;  %s17_s10 = int_to_ptr.vmem [resolvable:$true] %s16_s10  ;;  %s27_s12 = int_to_ptr.vmem [resolvable:$true] %s26_s12 }
   0x4   :  { %s124_s13 = scalar_lea.vmem %s17_s10, 256  ;;  %p129_p1 = scmp.lt.s32.totalorder %s17_s10, %s17_s10 }
   0x5   :  { %p125_p0 = scmp.ne.s32.totalorder %s17_s10, %s124_s13  ;;  %p130_p2 = scmp.lt.s32.totalorder %s124_s13, %s124_s13 }
   0x7   :  { %p131_p3 = por %p130_p2, %p129_p1 }
   0x9   :  { %p132_p4 = pnand %p131_p3, %p125_p0 }
   0xb   :  { %135 = shalt.err (!%p132_p4)
}
   0xc   :  { %19 = dma.hbm_to_vmem [thread:$0]  %s210_s0, 256, %s17_s10, [#allocation6]  }
   0xd   :  { %s144_s16 = scalar_lea.vmem %s27_s12, 256  ;;  %p149_p6 = scmp.lt.s32.totalorder %s27_s12, %s27_s12 }
   0xe   :  { %p145_p5 = scmp.ne.s32.totalorder %s27_s12, %s144_s16  ;;  %p150_p7 = scmp.lt.s32.totalorder %s144_s16, %s144_s16 }
  0x10   :  { %p151_p8 = por %p150_p7, %p149_p6 }
  0x12   :  { %p152_p9 = pnand %p151_p8, %p145_p5 }
  0x14   :  { %155 = shalt.err (!%p152_p9)
}
  0x15   :  { %29 = dma.hbm_to_vmem [thread:$0]  %s211_s1, 256, %s27_s12, [#allocation9]  }
  0x16   :  { %176 = dma.done.wait [#allocation6], 256  }
  0x17   :  { %177 = vsyncadd [#allocation6], 4294967040 }
  0x18   :  { %178 = dma.done.wait [#allocation9], 256  }
  0x19   :  { %179 = vsyncadd [#allocation9], 4294967040  ;;  %v44_v0 = vld [vmem:[#allocation8] sm:$0xff]  ;;  %v53_v1 = vld [vmem:[#allocation8 + $0x8] sm:$0xff]  ;;  %v184_v5 = vmov 0.0   ;;  %s185_s0 = smov [#allocation10]  }
  0x1a   :  { %v43_v2 = vld [vmem:[#allocation5] sm:$0xff]  ;;  %v59_v3 = vadd.f32 %v53_v1, %v44_v0  ;;  %v52_v4 = vld [vmem:[#allocation5 + $0x8] sm:$0xff]  ;;  %s98_s1 = sshll.u32 %s185_s0, 4  ;;  %s99_s1 = int_to_ptr.vmem [resolvable:$true] %s98_s1 }
  0x1b   :  { %vm45_vm0 = vcmp.gt.f32.partialorder %v43_v2, 0.0  ;;  %vm54_vm1 = vcmp.gt.f32.partialorder %v52_v4, 0.0  ;;  %s156_s19 = scalar_lea.vmem %s99_s1, 128  ;;  %p161_p11 = scmp.lt.s32.totalorder %s99_s1, %s99_s1 }
  0x1c   :  { %v108_v6 = vsel %vm45_vm0, 1.0, %v184_v5  ;;  %77 = vadd.xlane.f32.xlu0 %v59_v3  ;;  %v109_v7 = vsel %vm54_vm1, 1.0, %v184_v5  ;;  %p157_p10 = scmp.ne.s32.totalorder %s99_s1, %s156_s19  ;;  %p162_p12 = scmp.lt.s32.totalorder %s156_s19, %s156_s19 }
  0x1d   :  { %v48_v8 = vmul.f32 %v108_v6, %v44_v0  ;;  %v60_v9 = vadd.f32 %v109_v7, %v108_v6  ;;  %v57_v10 = vmul.f32 %v109_v7, %v53_v1 }
  0x1e   :  { %p163_p13 = por %p162_p12, %p161_p11 }
  0x1f   :  { %v58_v11 = vadd.f32 %v57_v10, %v48_v8 }
  0x20   :  { %80 = vadd.xlane.f32.xlu0 %v60_v9  ;;  %p164_p0 = pnand %p163_p13, %p157_p10 }
  0x21   :  { %74 = vadd.xlane.f32.xlu1 %v58_v11 }
  0xa5   :  { %v78_v12 = vpop.xlane.xlu0 %77 }
  0xa6   :  { %vm82_vm2 = vcmp.eq.f32.partialorder %v78_v12, 0.0 }
  0xa9   :  { %v81_v13 = vpop.xlane.xlu0 %80 }
  0xaa   :  { %vm83_vm3 = vcmp.eq.f32.partialorder %v81_v13, 0.0  ;;  %v85_v14 = vadd.f32 %v81_v13, %v78_v12  ;;  %v75_v16 = vpop.xlane.xlu1 %74 }
  0xab   :  { %vm84_vm4 = vmand %vm82_vm2, %vm83_vm3  ;;  %v87_v17 = vmul.f32 2.0, %v75_v16 }
  0xac   :  { %v86_v15 = vsel %vm84_vm4, 1.0, %v85_v14 }
  0xad   :  { %114 = vrcp.f32 %v86_v15 }
  0xba   :  { %v115_v18 = vpop.eup %114 }
  0xbb   :  { %v89_v19 = vmul.f32 %v115_v18, %v87_v17 }
  0xbd   :  { %v90_v20 = vsel %vm84_vm4, 1.0, %v89_v19 }
  0xbe   :  { %91 = vst [vmem:[#allocation10] sm:$0xff] %v90_v20 }
  0xbf   :  { %167 = shalt.err (!%p164_p0)
}
  0xc0   :  { %101 = dma.vmem_to_hbm [thread:$0]  %s99_s1, 128, %s212_s2, [#allocation7]  }
  0xc1   :  { %180 = dma.done.wait [#allocation7], 128  }
  0xc2   :  { %181 = vsyncadd [#allocation7], 4294967168 }
  0xc3   :  { %105 = vsyncpa [#allocation6], 1 }
  0xc4   :  { %106 = vsyncpa [#allocation9], 1 }
  0xc5   :  { %107 = vsyncpa [#allocation7], 1 }

</bundles_post_ra>
